<compile_context>
chip_gen: v5e
topology: v5e:2x2
jax: 0.10.0
libtpu: 0.0.40
codegen_flags: <defaults>
</compile_context>

<pallas_src>
import jax
import jax.numpy as jnp
from jax.experimental import pallas as pl
from jax.experimental.pallas import tpu as pltpu


def ddlerp_kernel(xp_ref, x_ref, xs_ref, wa_ref, wb_ref, base_ref, o_ref):
    # LoRA MLP: base + tanh(xp @ W_a) @ W_b  (f32 accumulation on the MXU,
    # tanh goes to the EUP).
    h = jnp.tanh(
        jnp.dot(xp_ref[...], wa_ref[...], preferred_element_type=jnp.float32)
    )
    y = base_ref[...].astype(jnp.float32) + jnp.dot(
        h.astype(wb_ref.dtype), wb_ref[...], preferred_element_type=jnp.float32
    )
    # torch.lerp(x, x_shifted, y) = x + y * (x_shifted - x)
    x = x_ref[...].astype(jnp.float32)
    xs = xs_ref[...].astype(jnp.float32)
    o_ref[...] = (x + y * (xs - x)).astype(o_ref.dtype)


def _round_up(n, m):
    return ((n + m - 1) // m) * m


def _sublane_multiple(dtype):
    # Sub-32-bit dtypes pack along sublanes: 8 rows (f32), 16 (bf16), 32 (int8/fp8).
    itemsize = jnp.dtype(dtype).itemsize
    return max(8, 32 // max(1, itemsize))


def _vmem_capacity_bytes():
    try:
        return int(pltpu.get_tpu_info().vmem_capacity_bytes)
    except Exception:
        return 64 << 20  # conservative: v7x per-TC VMEM


def _choose_row_tile(M, D, H, stream_itemsize, weights_bytes, vmem_cap, *, tm_max, sub):
    """Largest row tile whose VMEM footprint (streams + f32 intermediates) fits."""
    headroom = 8 << 20   # Mosaic internal scratch / semaphores
    slack = 4 << 20
    budget = vmem_cap - headroom - slack - weights_bytes
    # Per-row VMEM: double-buffered (xp, x, xs, out) streams + f32 intermediates
    # (h tile, y tile, up-cast x / xs working set).
    per_row = 2 * 4 * D * stream_itemsize + (3 * D + H) * 4
    tm = max(sub, budget // per_row)
    tm = min(tm, tm_max, _round_up(M, sub))
    if tm >= 128:
        # 128-row multiples give full MXU/sublane occupancy on every generation
        # (v5e MXU is 128-wide); the op is memory-bound so 256-alignment is moot.
        tm = (tm // 128) * 128
    else:
        tm = max(sub, (tm // sub) * sub)
    return int(tm)


def ddlerp(x_premixed, x, x_shifted, w_a, w_b, base, *, tm=None, tm_max=2048):
    """x_premixed, x, x_shifted: (B, T, D); w_a: (D, H); w_b: (H, D); base: (..., D)."""
    B, T, D = x.shape
    H = w_a.shape[1]
    M = B * T
    itemsize = jnp.dtype(x.dtype).itemsize
    w_itemsize = jnp.dtype(w_a.dtype).itemsize
    sub = _sublane_multiple(x.dtype)

    vmem_cap = _vmem_capacity_bytes()
    # Resident weights/base are still double-buffered by the default pipeline.
    # TODO(synk): pipeline_mode=pl.Buffered(1) on the three resident specs would
    # drop the unused second buffer; skipped - negligible at LoRA sizes and
    # single-buffered pipeline_mode is not uniformly supported across releases.
    weights_bytes = 2 * (2 * D * H + D) * w_itemsize

    if tm is None:
        tm = _choose_row_tile(M, D, H, itemsize, weights_bytes, vmem_cap,
                              tm_max=tm_max, sub=sub)

    # No host-side padding: ragged last block handled by Pallas store masking.
    grid = (pl.cdiv(M, tm),)

    xp2 = x_premixed.reshape(M, D)
    x2 = x.reshape(M, D)
    xs2 = x_shifted.reshape(M, D)
    base2 = base.reshape(1, D)

    row_spec = pl.BlockSpec((tm, D), lambda i: (i, 0))
    # Constant index_map -> weights fetched once, resident across the grid.
    full_wa = pl.BlockSpec((D, H), lambda i: (0, 0))
    full_wb = pl.BlockSpec((H, D), lambda i: (0, 0))
    full_base = pl.BlockSpec((1, D), lambda i: (0, 0))

    # VMEM actually needed: double-buffered streams + f32 intermediates
    # + resident weights; cap below the physical capacity.
    need = (2 * 4 * tm * D * itemsize        # xp, x, xs, out (double-buffered)
            + tm * (3 * D + H) * 4           # h, y, f32 up-cast working set
            + weights_bytes)
    vmem_limit = int(min(vmem_cap - (2 << 20), max(need + (4 << 20), 32 << 20)))

    cost = pl.CostEstimate(
        flops=4 * M * D * H,                  # two (M,D)x(D,H)-class matmuls
        transcendentals=M * H,                # tanh
        bytes_accessed=4 * M * D * itemsize   # 3 input streams + 1 output
        + (2 * D * H + D) * w_itemsize,       # weights + base
    )

    out = pl.pallas_call(
        ddlerp_kernel,
        out_shape=jax.ShapeDtypeStruct((M, D), x.dtype),
        grid_spec=pltpu.PrefetchScalarGridSpec(
            num_scalar_prefetch=0,
            grid=grid,
            in_specs=[row_spec, row_spec, row_spec, full_wa, full_wb, full_base],
            out_specs=row_spec,
        ),
        compiler_params=pltpu.CompilerParams(
            dimension_semantics=("parallel",),   # megacore-shardable on v7x
            vmem_limit_bytes=vmem_limit,
        ),
        cost_estimate=cost,
    )(xp2, x2, xs2, w_a, w_b, base2)

    return out.reshape(B, T, D)


def ddlerp_ref(x_premixed, x, x_shifted, w_a, w_b, base):
    y = base + jnp.tanh(x_premixed @ w_a) @ w_b
    return x + y * (x_shifted - x)


if __name__ == "__main__":
    B, T, D, H = 2, 8, 32, 16
    key = jax.random.PRNGKey(0)
    k1, k2, k3, k4, k5, k6 = jax.random.split(key, 6)

    x_premixed = jax.random.normal(k1, (B, T, D), jnp.float32)
    x = jax.random.normal(k2, (B, T, D), jnp.float32)
    x_shifted = jax.random.normal(k3, (B, T, D), jnp.float32)

    # Deterministic parameter init (synthetic; no checkpoint load).
    w_a = jax.random.normal(k4, (D, H), jnp.float32) * 0.1
    w_b = jax.random.normal(k5, (H, D), jnp.float32) * 0.1
    base = jax.random.normal(k6, (1, 1, D), jnp.float32) * 0.1

    out = jax.block_until_ready(ddlerp(x_premixed, x, x_shifted, w_a, w_b, base))
    ref = ddlerp_ref(x_premixed, x, x_shifted, w_a, w_b, base)
    assert out.shape == (B, T, D)
    assert jnp.allclose(out, ref, atol=1e-5, rtol=1e-5), "mismatch vs reference"

    # Exercise the (now pad-free) ragged last block: M = 16 rows with tm = 8
    # gives a multi-step grid; and a forced tm that does not divide M checks
    # Pallas' masked edge-block handling.
    out2 = jax.block_until_ready(
        ddlerp(x_premixed, x, x_shifted, w_a, w_b, base, tm=8))
    assert jnp.allclose(out2, ref, atol=1e-5, rtol=1e-5), "mismatch (tm=8)"

    print("KERNEL_OK")
</pallas_src>

<mosaic_0001>
module attributes {stable_mosaic.version = 11 : i64} {
  func.func @ddlerp_kernel(%arg0: i32, %arg1: memref<16x32xf32, #tpu.memory_space<vmem>>, %arg2: memref<16x32xf32, #tpu.memory_space<vmem>>, %arg3: memref<16x32xf32, #tpu.memory_space<vmem>>, %arg4: memref<32x16xf32, #tpu.memory_space<vmem>>, %arg5: memref<16x32xf32, #tpu.memory_space<vmem>>, %arg6: memref<1x32xf32, #tpu.memory_space<vmem>>, %arg7: memref<16x32xf32, #tpu.memory_space<vmem>>) attributes {dimension_semantics = [#tpu.dimension_semantics<parallel>], iteration_bounds = array<i64: 1>, scalar_prefetch = 0 : i64, scratch_operands = 0 : i64, tpu.core_type = #tpu.core_type<tc>, window_params = [{transform_indices = @transform_0, window_bounds = array<i64: 16, 32>}, {transform_indices = @transform_1, window_bounds = array<i64: 16, 32>}, {transform_indices = @transform_2, window_bounds = array<i64: 16, 32>}, {pipeline_mode = #tpu.pipeline_mode<synchronous>, transform_indices = @transform_3, window_bounds = array<i64: 32, 16>}, {pipeline_mode = #tpu.pipeline_mode<synchronous>, transform_indices = @transform_4, window_bounds = array<i64: 16, 32>}, {pipeline_mode = #tpu.pipeline_mode<synchronous>, transform_indices = @transform_5, window_bounds = array<i64: 1, 32>}, {transform_indices = @transform_6, window_bounds = array<i64: 16, 32>}]} {
    %c0 = arith.constant 0 : index
    %c0_0 = arith.constant 0 : index
    %0 = vector.load %arg1[%c0, %c0_0] : memref<16x32xf32, #tpu.memory_space<vmem>>, vector<16x32xf32>
    %c0_1 = arith.constant 0 : index
    %c0_2 = arith.constant 0 : index
    %1 = vector.load %arg4[%c0_1, %c0_2] : memref<32x16xf32, #tpu.memory_space<vmem>>, vector<32x16xf32>
    %cst = arith.constant dense<0.000000e+00> : vector<16x16xf32>
    %2 = tpu.matmul %0, %1, %cst {dimension_numbers = #tpu.dot_dimension_numbers<[1], [0], [0], [1], [0, 0, 1, 1], [], []>} : vector<16x32xf32>, vector<32x16xf32>, vector<16x16xf32> -> vector<16x16xf32>
    %3 = math.tanh %2 : vector<16x16xf32>
    %c0_3 = arith.constant 0 : index
    %c0_4 = arith.constant 0 : index
    %4 = vector.load %arg6[%c0_3, %c0_4] : memref<1x32xf32, #tpu.memory_space<vmem>>, vector<1x32xf32>
    %c0_5 = arith.constant 0 : index
    %c0_6 = arith.constant 0 : index
    %5 = vector.load %arg5[%c0_5, %c0_6] : memref<16x32xf32, #tpu.memory_space<vmem>>, vector<16x32xf32>
    %cst_7 = arith.constant dense<0.000000e+00> : vector<16x32xf32>
    %6 = tpu.matmul %3, %5, %cst_7 {dimension_numbers = #tpu.dot_dimension_numbers<[1], [0], [0], [1], [0, 0, 1, 1], [], []>} : vector<16x16xf32>, vector<16x32xf32>, vector<16x32xf32> -> vector<16x32xf32>
    %7 = vector.broadcast %4 : vector<1x32xf32> to vector<16x32xf32>
    %8 = arith.addf %7, %6 : vector<16x32xf32>
    %c0_8 = arith.constant 0 : index
    %c0_9 = arith.constant 0 : index
    %9 = vector.load %arg2[%c0_8, %c0_9] : memref<16x32xf32, #tpu.memory_space<vmem>>, vector<16x32xf32>
    %c0_10 = arith.constant 0 : index
    %c0_11 = arith.constant 0 : index
    %10 = vector.load %arg3[%c0_10, %c0_11] : memref<16x32xf32, #tpu.memory_space<vmem>>, vector<16x32xf32>
    %11 = arith.subf %10, %9 : vector<16x32xf32>
    %12 = arith.mulf %8, %11 : vector<16x32xf32>
    %13 = arith.addf %9, %12 : vector<16x32xf32>
    %c0_12 = arith.constant 0 : index
    %c0_13 = arith.constant 0 : index
    %14 = vector.load %arg7[%c0_12, %c0_13] : memref<16x32xf32, #tpu.memory_space<vmem>>, vector<16x32xf32>
    tpu.vector_store %arg7[%c0_12, %c0_13], %13 {strides = array<i32>} : memref<16x32xf32, #tpu.memory_space<vmem>>, vector<16x32xf32>,
    return
  }
  func.func @transform_0(%arg0: i32) -> (i32, i32) {
    %c0_i32 = arith.constant 0 : i32
    %c0_i32_0 = arith.constant 0 : i32
    return %arg0, %c0_i32 : i32, i32
  }
  func.func @transform_1(%arg0: i32) -> (i32, i32) {
    %c0_i32 = arith.constant 0 : i32
    %c0_i32_0 = arith.constant 0 : i32
    return %arg0, %c0_i32 : i32, i32
  }
  func.func @transform_2(%arg0: i32) -> (i32, i32) {
    %c0_i32 = arith.constant 0 : i32
    %c0_i32_0 = arith.constant 0 : i32
    return %arg0, %c0_i32 : i32, i32
  }
  func.func @transform_3(%arg0: i32) -> (i32, i32) {
    %c0_i32 = arith.constant 0 : i32
    %c0_i32_0 = arith.constant 0 : i32
    %c0_i32_1 = arith.constant 0 : i32
    return %c0_i32, %c0_i32_0 : i32, i32
  }
  func.func @transform_4(%arg0: i32) -> (i32, i32) {
    %c0_i32 = arith.constant 0 : i32
    %c0_i32_0 = arith.constant 0 : i32
    %c0_i32_1 = arith.constant 0 : i32
    return %c0_i32, %c0_i32_0 : i32, i32
  }
  func.func @transform_5(%arg0: i32) -> (i32, i32) {
    %c0_i32 = arith.constant 0 : i32
    %c0_i32_0 = arith.constant 0 : i32
    %c0_i32_1 = arith.constant 0 : i32
    return %c0_i32, %c0_i32_0 : i32, i32
  }
  func.func @transform_6(%arg0: i32) -> (i32, i32) {
    %c0_i32 = arith.constant 0 : i32
    %c0_i32_0 = arith.constant 0 : i32
    return %arg0, %c0_i32 : i32, i32
  }
}

</mosaic_0001>

<bundles_post_ra>
// kernel: tpu_custom_call.1
= control target key start
LH: loop header
LB: loop body
LE: loop exit
PB: predicated region body
PF: predicated region fallthrough
CT: control target
= control target key end

     0   :  { %11 = vsyncpa [#allocation3], 0  ;;  %s306_s0 = inlined_call_operand.vmem [shape: f32[16,32], index: 0, kind: input, shape index: {}]   ;;  %s307_s1 = inlined_call_operand.vmem [shape: f32[16,32], index: 1, kind: input, shape index: {}]   ;;  %s308_s2 = inlined_call_operand.vmem [shape: f32[16,32], index: 2, kind: input, shape index: {}]   ;;  %s309_s3 = inlined_call_operand.vmem [shape: f32[32,16], index: 3, kind: input, shape index: {}]   ;;  %s310_s4 = inlined_call_operand.hbm [shape: f32[16,32], index: 4, kind: input, shape index: {}]   ;;  %s311_s5 = inlined_call_operand.vmem [shape: f32[1,32], index: 5, kind: input, shape index: {}]   ;;  %s312_s6 = inlined_call_operand.hbm [shape: f32[16,32], index: 6, kind: output, shape index: {}]  }
   0x1   :  { %12 = vsyncpa [#allocation4], 0  ;;  %s25_s23 = sshll.u32 %s310_s4, 4  ;;  %s218_s24 = smov [#allocation2]   ;;  %s26_s23 = int_to_ptr.hbm [resolvable:$true] %s25_s23 }
   0x2   :  { %s27_s25 = sshll.u32 %s218_s24, 4  ;;  %s219_s26 = smov 128   ;;  %s28_s25 = int_to_ptr.vmem [resolvable:$true] %s27_s25 }
   0x3   :  { %s220_s27 = smov 8  }
   0x4   :  { %33 = dma.hbm_to_vmem [thread:$0]  %s26_s23, 256, %s28_s25, [#allocation3], %s219_s26, %s219_s26, %s220_s27  }
   0x5   :  { %214 = dma.done.wait [#allocation3], 256  }
   0x6   :  { %215 = vsyncadd [#allocation3], 4294967040  ;;  %v45_v0 = vld [vmem:[%s309_s3 + $0x18] sm:$0xff]  ;;  %v44_v1 = vld [vmem:[%s309_s3 + $0x10] sm:$0xff]  ;;  %vm46_vm0 = vcmask 261120   ;;  %vm81_vm1 = vcmask 130048  }
   0x7   :  { %151 = vmatpush.msra.mxu2 %v45_v0  ;;  %65 = vmatpush.msra.mxu0 %v45_v0  ;;  %v43_v2 = vld [vmem:[%s309_s3 + $0x8] sm:$0xff]  ;;  %v42_v3 = vld [vmem:[%s309_s3] sm:$0xff]  ;;  %s221_s23 = smov [#allocation5]   ;;  %s134_s28 = sshll.u32 %s312_s6, 4  ;;  %s135_s28 = int_to_ptr.hbm [resolvable:$true] %s134_s28 }
   0x8   :  { %v41_v4 = vld [vmem:[%s306_s0 + $0x8] sm:$0xff]  ;;  %v40_v5 = vld [vmem:[%s306_s0] sm:$0xff] }
   0x9   :  { %152 = vmatpush.msra.mxu2 %v44_v1  ;;  %66 = vmatpush.msra.mxu0 %v44_v1  ;;  %v80_v6 = vld [vmem:[#allocation2 + $0x8] sm:$0xff]  ;;  %v79_v7 = vld [vmem:[#allocation2] sm:$0xff] }
   0xa   :  { %155 = vmatpush.msra.mxu3 %v80_v6  ;;  %102 = vmatpush.msra.mxu1 %v80_v6  ;;  %v116_v12 = vld [vmem:[%s307_s1] sm:$0xff]  ;;  %v117_v20 = vld [vmem:[%s307_s1 + $0x8] sm:$0xff] }
   0xb   :  { %153 = vmatpush.msra.mxu2 %v43_v2  ;;  %67 = vmatpush.msra.mxu0 %v43_v2  ;;  %v118_v13 = vld [vmem:[%s308_s2] sm:$0xff]  ;;  %v119_v21 = vld [vmem:[%s308_s2 + $0x8] sm:$0xff] }
   0xc   :  { %156 = vmatpush.msra.mxu3 %v79_v7  ;;  %103 = vmatpush.msra.mxu1 %v79_v7  ;;  %v161_v14 = vld [vmem:[%s311_s5] ss:$0 sm:$0xff]  ;;  %v120_v15 = vsub.f32 %v118_v13, %v116_v12  ;;  %v121_v22 = vsub.f32 %v119_v21, %v117_v20  ;;  %s132_s5 = sshll.u32 %s221_s23, 4  ;;  %s133_s5 = int_to_ptr.vmem [resolvable:$true] %s132_s5 }
   0xd   :  { %154 = vmatpush.msra.mxu2 %v42_v3  ;;  %68 = vmatpush.msra.mxu0 %v42_v3 }
   0xe   :  { %148 = vmatmul.msk.f32.vlgmr.msra.gmra.mxu2 %vm46_vm0, %v41_v4  ;;  %147 = vmatmul.msk.f32.vlgmr.msra.gmra.mxu0 %vm46_vm0, %v40_v5 }
  0x8b   :  { %v70_v8 = vpop.f32.mrf.mxu0 }
  0x8c   :  { %162 = vtanh.f32 %v70_v8 }
  0x91   :  { %v73_v9 = vpop.f32.mrf.mxu2 }
  0x92   :  { %v163_v10 = vpop.eup %162  ;;  %164 = vtanh.f32 %v73_v9 }
  0x93   :  { %149 = vmatmul.msk.f32.vlgmr.msra.gmra.mxu1 %vm81_vm1, %v163_v10 }
  0x98   :  { %v165_v11 = vpop.eup %164 }
  0x99   :  { %150 = vmatmul.msk.f32.vlgmr.msra.gmra.mxu3 %vm81_vm1, %v165_v11 }
 0x110   :  { %v105_v16 = vpop.f32.mrf.mxu1 }
 0x111   :  { %v114_v17 = vadd.f32 %v161_v14, %v105_v16 }
 0x113   :  { %v122_v18 = vmul.f32 %v120_v15, %v114_v17 }
 0x115   :  { %v124_v19 = vadd.f32 %v122_v18, %v116_v12 }
 0x117   :  { %126 = vst.msk [vmem:[#allocation5] sm:$0xff] %vm46_vm0, %v124_v19 }
 0x11c   :  { %v108_v23 = vpop.f32.mrf.mxu3 }
 0x11d   :  { %v115_v24 = vadd.f32 %v161_v14, %v108_v23 }
 0x11f   :  { %v123_v25 = vmul.f32 %v121_v22, %v115_v24 }
 0x121   :  { %v125_v26 = vadd.f32 %v123_v25, %v117_v20 }
 0x123   :  { %127 = vst.msk [vmem:[#allocation5 + $0x8] sm:$0xff] %vm46_vm0, %v125_v26 }
 0x124   :  { %140 = dma.vmem_to_hbm [thread:$0]  %s133_s5, 256, %s135_s28, [#allocation4], %s219_s26, %s219_s26, %s220_s27  }
 0x125   :  { %216 = dma.done.wait [#allocation4], 256  }
 0x126   :  { %217 = vsyncadd [#allocation4], 4294967040 }
 0x127   :  { %145 = vsyncpa [#allocation3], 1 }
 0x128   :  { %146 = vsyncpa [#allocation4], 1 }

</bundles_post_ra>
